<compile_context>
chip_gen: v7x
topology: tpu7x:2x2x1
jax: 0.10.0
libtpu: 0.0.40
codegen_flags: <defaults>
</compile_context>

<pallas_src>
import functools

import jax
import jax.numpy as jnp
from jax.experimental import pallas as pl
from jax.experimental.pallas import tpu as pltpu


def _round_up(v, m):
    return ((v + m - 1) // m) * m


def _cdiv(a, b):
    return (a + b - 1) // b


_VMEM_FALLBACK_BYTES = 64 * 1024 * 1024  # safe lower bound (v7x per-TC VMEM)


@functools.lru_cache(maxsize=1)
def _vmem_capacity_bytes():
    try:
        return int(pltpu.get_tpu_info().vmem_capacity_bytes)
    except Exception:  # pragma: no cover - conservative fallback
        return _VMEM_FALLBACK_BYTES


def _fc_kernel(x_ref, w1l_ref, b1l_ref, w2_ref, w3_ref, b23_ref, o_ref):
    Hp = w2_ref.shape[0]
    # x arrives in f32 (no wrapper cast pass); cast to bf16 on the VPU.
    x = x_ref[...].astype(jnp.bfloat16)              # (bm, Hp)

    # Fused [layer1 | skip]: one x @ (Hp, 2*Hp) matmul, f32 accumulation.
    hs = jnp.dot(x, w1l_ref[...], preferred_element_type=jnp.float32)
    hs = hs + b1l_ref[...]                           # (bm, 2*Hp) f32

    # Park the skip branch in the already-allocated f32 output buffer so it is
    # not a bm*Hp f32 value held live across the next two matmuls (spill relief).
    o_ref[...] = hs[:, Hp:]

    # 3-layer ReLU branch; bf16 inter-layer activations for the MXU.
    h = jnp.maximum(hs[:, :Hp], 0.0).astype(jnp.bfloat16)
    h = jnp.dot(h, w2_ref[...], preferred_element_type=jnp.float32) + b23_ref[0:1, :]
    h = jnp.maximum(h, 0.0).astype(jnp.bfloat16)
    h = jnp.dot(h, w3_ref[...], preferred_element_type=jnp.float32) + b23_ref[1:2, :]
    h = jnp.maximum(h, 0.0)

    o_ref[...] = o_ref[...] + h


def prepare_params(params):
    """One-time packing of FC params for the kernel.

    Pads the hidden dim to a multiple of 128 (lane-dense), fuses [w1 | wl] and
    [b2 ; b3], and casts weights to bf16.  Call once; reuse the result for
    every fc_forward call so the pack/cast never runs inside the hot path.
    """
    H = params["w1"].shape[0]
    Hp = _round_up(H, 128)

    def pad_w(w):   # (H, H) -> (Hp, Hp)
        return jnp.pad(w, ((0, Hp - H), (0, Hp - H)))

    def pad_b(b):   # (1, H) -> (1, Hp)
        return jnp.pad(b, ((0, 0), (0, Hp - H)))

    w1l = jnp.concatenate([pad_w(params["w1"]), pad_w(params["wl"])],
                          axis=1).astype(jnp.bfloat16)           # (Hp, 2Hp)
    b1l = jnp.concatenate([pad_b(params["b1"]), pad_b(params["bl"])],
                          axis=1).astype(jnp.float32)            # (1, 2Hp)
    w2 = pad_w(params["w2"]).astype(jnp.bfloat16)                # (Hp, Hp)
    w3 = pad_w(params["w3"]).astype(jnp.bfloat16)                # (Hp, Hp)
    b23 = jnp.concatenate([pad_b(params["b2"]), pad_b(params["b3"])],
                          axis=0).astype(jnp.float32)            # (2, Hp)
    return {"w1l": w1l, "b1l": b1l, "w2": w2, "w3": w3, "b23": b23}


@functools.partial(jax.jit, static_argnames=("block_m",))
def fc_forward(x, packed, block_m=256):
    """x: [B, H] float32.  packed: output of prepare_params()."""
    B, H = x.shape
    Hp = packed["w2"].shape[0]

    # Batch tile: multiple of 16 (bf16 sublane tile).  For moderate batches,
    # aim for >=2 grid steps so v7x's two TensorCores both get work.
    bm = min(block_m, _round_up(_cdiv(B, 2), 16), _round_up(B, 16))
    bm = max(bm, 16)
    B_pad = _round_up(B, bm)
    grid = (B_pad // bm,)

    # Only pad x when actually needed; keep f32 (the kernel casts to bf16).
    if B_pad != B or Hp != H:
        x_in = jnp.pad(x, ((0, B_pad - B), (0, Hp - H)))
    else:
        x_in = x

    # --- VMEM budget (actual buffer counts) -------------------------------
    w_bytes = (Hp * 2 * Hp + 2 * Hp * Hp) * 2        # bf16 weights, Buffered(1)
    b_bytes = (2 * Hp + 2 * Hp) * 4                  # f32 biases, Buffered(1)
    io_bytes = 2 * (bm * Hp * 4) + 2 * (bm * Hp * 4)  # x + out, f32, 2-buffered
    act_bytes = bm * 2 * Hp * 4 + 3 * bm * Hp * 4     # hs + inter-layer temps
    need = w_bytes + b_bytes + io_bytes + act_bytes
    vmem_cap = _vmem_capacity_bytes()
    vmem_limit = int(min(max(need + (4 << 20), 32 * 1024 * 1024),
                         int(0.9 * vmem_cap)))

    if need + (4 << 20) > int(0.9 * vmem_cap):
        # TODO(synk): tiled Pallas path (grid over weight columns with a
        # K-reduction axis) for hidden dims whose weights do not fit VMEM;
        # until then, degrade gracefully to XLA with identical math.
        x_b = x_in.astype(jnp.bfloat16)
        hs = jnp.dot(x_b, packed["w1l"],
                     preferred_element_type=jnp.float32) + packed["b1l"]
        skip = hs[:, Hp:]
        h = jnp.maximum(hs[:, :Hp], 0.0).astype(jnp.bfloat16)
        h = jnp.maximum(jnp.dot(h, packed["w2"],
                                preferred_element_type=jnp.float32)
                        + packed["b23"][0:1, :], 0.0).astype(jnp.bfloat16)
        h = jnp.maximum(jnp.dot(h, packed["w3"],
                                preferred_element_type=jnp.float32)
                        + packed["b23"][1:2, :], 0.0)
        out = (h + skip).astype(x.dtype)
        return out[:B, :H]

    flops = 8 * B_pad * Hp * Hp                      # 4 HpxHp-equivalent matmuls
    bytes_accessed = B_pad * Hp * 4 * 2 + w_bytes + b_bytes

    out = pl.pallas_call(
        _fc_kernel,
        out_shape=jax.ShapeDtypeStruct((B_pad, Hp), x.dtype),
        grid_spec=pltpu.PrefetchScalarGridSpec(
            num_scalar_prefetch=0,
            grid=grid,
            in_specs=[
                pl.BlockSpec((bm, Hp), lambda i: (i, 0)),          # x tile (f32)
                pl.BlockSpec((Hp, 2 * Hp), lambda i: (0, 0),
                             pipeline_mode=pl.Buffered(1)),        # [w1 | wl]
                pl.BlockSpec((1, 2 * Hp), lambda i: (0, 0),
                             pipeline_mode=pl.Buffered(1)),        # [b1 | bl]
                pl.BlockSpec((Hp, Hp), lambda i: (0, 0),
                             pipeline_mode=pl.Buffered(1)),        # w2
                pl.BlockSpec((Hp, Hp), lambda i: (0, 0),
                             pipeline_mode=pl.Buffered(1)),        # w3
                pl.BlockSpec((2, Hp), lambda i: (0, 0),
                             pipeline_mode=pl.Buffered(1)),        # [b2 ; b3]
            ],
            out_specs=pl.BlockSpec((bm, Hp), lambda i: (i, 0)),
        ),
        compiler_params=pltpu.CompilerParams(
            dimension_semantics=("parallel",),
            vmem_limit_bytes=vmem_limit),
        cost_estimate=pl.CostEstimate(flops=flops, transcendentals=0,
                                      bytes_accessed=bytes_accessed),
    )(x_in, packed["w1l"], packed["b1l"], packed["w2"], packed["w3"],
      packed["b23"])

    if B_pad != B or Hp != H:
        out = out[:B, :H]
    return out


def init_params(key, hidden_dim):
    """Deterministic init mimicking nn.Linear's U(-1/sqrt(fan_in), 1/sqrt(fan_in))."""
    bound = 1.0 / jnp.sqrt(hidden_dim)
    keys = jax.random.split(key, 8)

    def w(k):  # stored directly in (in, out) layout == W.T of PyTorch
        return jax.random.uniform(k, (hidden_dim, hidden_dim), jnp.float32,
                                  minval=-bound, maxval=bound)

    def b(k):
        return jax.random.uniform(k, (1, hidden_dim), jnp.float32,
                                  minval=-bound, maxval=bound)

    return {
        "w1": w(keys[0]), "b1": b(keys[1]),
        "w2": w(keys[2]), "b2": b(keys[3]),
        "w3": w(keys[4]), "b3": b(keys[5]),
        "wl": w(keys[6]), "bl": b(keys[7]),
    }


def fc_reference(x, p):
    h = jnp.maximum(x @ p["w1"] + p["b1"], 0.0)
    h = jnp.maximum(h @ p["w2"] + p["b2"], 0.0)
    h = jnp.maximum(h @ p["w3"] + p["b3"], 0.0)
    return h + (x @ p["wl"] + p["bl"])


if __name__ == "__main__":
    key = jax.random.PRNGKey(0)
    k_x, k_p = jax.random.split(key)

    batch, hidden_dim = 16, 32
    x = jax.random.normal(k_x, (batch, hidden_dim), jnp.float32)
    params = init_params(k_p, hidden_dim)

    # One-time packing (amortized across all forward calls).
    packed = jax.tree_util.tree_map(jax.block_until_ready, prepare_params(params))

    out = fc_forward(x, packed)
    out = jax.block_until_ready(out)

    ref = fc_reference(x, params)
    assert out.shape == (batch, hidden_dim)
    # bf16 matmul inputs with f32 accumulation -> relaxed tolerance vs f32 ref.
    assert jnp.allclose(out, ref, atol=5e-2, rtol=5e-2), "mismatch vs reference"

    print("KERNEL_OK")
</pallas_src>

<mosaic_0001>
module attributes {stable_mosaic.version = 11 : i64} {
  func.func @_fc_kernel(%arg0: i32, %arg1: memref<16x128xf32, #tpu.memory_space<vmem>>, %arg2: memref<128x256xbf16, #tpu.memory_space<vmem>>, %arg3: memref<1x256xf32, #tpu.memory_space<vmem>>, %arg4: memref<128x128xbf16, #tpu.memory_space<vmem>>, %arg5: memref<128x128xbf16, #tpu.memory_space<vmem>>, %arg6: memref<2x128xf32, #tpu.memory_space<vmem>>, %arg7: memref<16x128xf32, #tpu.memory_space<vmem>>) attributes {dimension_semantics = [#tpu.dimension_semantics<parallel>], iteration_bounds = array<i64: 1>, scalar_prefetch = 0 : i64, scratch_operands = 0 : i64, tpu.core_type = #tpu.core_type<tc>, window_params = [{transform_indices = @transform_0, window_bounds = array<i64: 16, 128>}, {pipeline_mode = #tpu.pipeline_mode<synchronous>, transform_indices = @transform_1, window_bounds = array<i64: 128, 256>}, {pipeline_mode = #tpu.pipeline_mode<synchronous>, transform_indices = @transform_2, window_bounds = array<i64: 1, 256>}, {pipeline_mode = #tpu.pipeline_mode<synchronous>, transform_indices = @transform_3, window_bounds = array<i64: 128, 128>}, {pipeline_mode = #tpu.pipeline_mode<synchronous>, transform_indices = @transform_4, window_bounds = array<i64: 128, 128>}, {pipeline_mode = #tpu.pipeline_mode<synchronous>, transform_indices = @transform_5, window_bounds = array<i64: 2, 128>}, {transform_indices = @transform_6, window_bounds = array<i64: 16, 128>}]} {
    %c0 = arith.constant 0 : index
    %c0_0 = arith.constant 0 : index
    %0 = vector.load %arg1[%c0, %c0_0] : memref<16x128xf32, #tpu.memory_space<vmem>>, vector<16x128xf32>
    %1 = arith.truncf %0 : vector<16x128xf32> to vector<16x128xbf16>
    %c0_1 = arith.constant 0 : index
    %c0_2 = arith.constant 0 : index
    %2 = vector.load %arg2[%c0_1, %c0_2] : memref<128x256xbf16, #tpu.memory_space<vmem>>, vector<128x256xbf16>
    %cst = arith.constant dense<0.000000e+00> : vector<16x256xf32>
    %3 = tpu.matmul %1, %2, %cst {dimension_numbers = #tpu.dot_dimension_numbers<[1], [0], [0], [1], [0, 0, 1, 1], [], []>} : vector<16x128xbf16>, vector<128x256xbf16>, vector<16x256xf32> -> vector<16x256xf32>
    %c0_3 = arith.constant 0 : index
    %c0_4 = arith.constant 0 : index
    %4 = vector.load %arg3[%c0_3, %c0_4] : memref<1x256xf32, #tpu.memory_space<vmem>>, vector<1x256xf32>
    %5 = vector.broadcast %4 : vector<1x256xf32> to vector<16x256xf32>
    %6 = arith.addf %3, %5 : vector<16x256xf32>
    %7 = vector.extract_strided_slice %6 {offsets = [0, 128], sizes = [16, 128], strides = [1, 1]} : vector<16x256xf32> to vector<16x128xf32>
    %c0_5 = arith.constant 0 : index
    %c0_6 = arith.constant 0 : index
    %8 = vector.load %arg7[%c0_5, %c0_6] : memref<16x128xf32, #tpu.memory_space<vmem>>, vector<16x128xf32>
    tpu.vector_store %arg7[%c0_5, %c0_6], %7 {strides = array<i32>} : memref<16x128xf32, #tpu.memory_space<vmem>>, vector<16x128xf32>,
    %9 = vector.extract_strided_slice %6 {offsets = [0, 0], sizes = [16, 128], strides = [1, 1]} : vector<16x256xf32> to vector<16x128xf32>
    %cst_7 = arith.constant 0.000000e+00 : f32
    %10 = vector.broadcast %cst_7 : f32 to vector<16x128xf32>
    %11 = arith.maximumf %9, %10 : vector<16x128xf32>
    %12 = arith.truncf %11 : vector<16x128xf32> to vector<16x128xbf16>
    %c0_8 = arith.constant 0 : index
    %c0_9 = arith.constant 0 : index
    %13 = vector.load %arg4[%c0_8, %c0_9] : memref<128x128xbf16, #tpu.memory_space<vmem>>, vector<128x128xbf16>
    %cst_10 = arith.constant dense<0.000000e+00> : vector<16x128xf32>
    %14 = tpu.matmul %12, %13, %cst_10 {dimension_numbers = #tpu.dot_dimension_numbers<[1], [0], [0], [1], [0, 0, 1, 1], [], []>} : vector<16x128xbf16>, vector<128x128xbf16>, vector<16x128xf32> -> vector<16x128xf32>
    %c0_11 = arith.constant 0 : index
    %c0_12 = arith.constant 0 : index
    %15 = vector.load %arg6[%c0_11, %c0_12] : memref<2x128xf32, #tpu.memory_space<vmem>>, vector<1x128xf32>
    %16 = vector.broadcast %15 : vector<1x128xf32> to vector<16x128xf32>
    %17 = arith.addf %14, %16 : vector<16x128xf32>
    %cst_13 = arith.constant 0.000000e+00 : f32
    %18 = vector.broadcast %cst_13 : f32 to vector<16x128xf32>
    %19 = arith.maximumf %17, %18 : vector<16x128xf32>
    %20 = arith.truncf %19 : vector<16x128xf32> to vector<16x128xbf16>
    %c0_14 = arith.constant 0 : index
    %c0_15 = arith.constant 0 : index
    %21 = vector.load %arg5[%c0_14, %c0_15] : memref<128x128xbf16, #tpu.memory_space<vmem>>, vector<128x128xbf16>
    %cst_16 = arith.constant dense<0.000000e+00> : vector<16x128xf32>
    %22 = tpu.matmul %20, %21, %cst_16 {dimension_numbers = #tpu.dot_dimension_numbers<[1], [0], [0], [1], [0, 0, 1, 1], [], []>} : vector<16x128xbf16>, vector<128x128xbf16>, vector<16x128xf32> -> vector<16x128xf32>
    %c1 = arith.constant 1 : index
    %c0_17 = arith.constant 0 : index
    %23 = vector.load %arg6[%c1, %c0_17] : memref<2x128xf32, #tpu.memory_space<vmem>>, vector<1x128xf32>
    %24 = vector.broadcast %23 : vector<1x128xf32> to vector<16x128xf32>
    %25 = arith.addf %22, %24 : vector<16x128xf32>
    %cst_18 = arith.constant 0.000000e+00 : f32
    %26 = vector.broadcast %cst_18 : f32 to vector<16x128xf32>
    %27 = arith.maximumf %25, %26 : vector<16x128xf32>
    %c0_19 = arith.constant 0 : index
    %c0_20 = arith.constant 0 : index
    %28 = vector.load %arg7[%c0_19, %c0_20] : memref<16x128xf32, #tpu.memory_space<vmem>>, vector<16x128xf32>
    %29 = arith.addf %28, %27 : vector<16x128xf32>
    %c0_21 = arith.constant 0 : index
    %c0_22 = arith.constant 0 : index
    %30 = vector.load %arg7[%c0_21, %c0_22] : memref<16x128xf32, #tpu.memory_space<vmem>>, vector<16x128xf32>
    tpu.vector_store %arg7[%c0_21, %c0_22], %29 {strides = array<i32>} : memref<16x128xf32, #tpu.memory_space<vmem>>, vector<16x128xf32>,
    return
  }
  func.func @transform_0(%arg0: i32) -> (i32, i32) {
    %c0_i32 = arith.constant 0 : i32
    %c0_i32_0 = arith.constant 0 : i32
    return %arg0, %c0_i32 : i32, i32
  }
  func.func @transform_1(%arg0: i32) -> (i32, i32) {
    %c0_i32 = arith.constant 0 : i32
    %c0_i32_0 = arith.constant 0 : i32
    %c0_i32_1 = arith.constant 0 : i32
    return %c0_i32, %c0_i32_0 : i32, i32
  }
  func.func @transform_2(%arg0: i32) -> (i32, i32) {
    %c0_i32 = arith.constant 0 : i32
    %c0_i32_0 = arith.constant 0 : i32
    %c0_i32_1 = arith.constant 0 : i32
    return %c0_i32, %c0_i32_0 : i32, i32
  }
  func.func @transform_3(%arg0: i32) -> (i32, i32) {
    %c0_i32 = arith.constant 0 : i32
    %c0_i32_0 = arith.constant 0 : i32
    %c0_i32_1 = arith.constant 0 : i32
    return %c0_i32, %c0_i32_0 : i32, i32
  }
  func.func @transform_4(%arg0: i32) -> (i32, i32) {
    %c0_i32 = arith.constant 0 : i32
    %c0_i32_0 = arith.constant 0 : i32
    %c0_i32_1 = arith.constant 0 : i32
    return %c0_i32, %c0_i32_0 : i32, i32
  }
  func.func @transform_5(%arg0: i32) -> (i32, i32) {
    %c0_i32 = arith.constant 0 : i32
    %c0_i32_0 = arith.constant 0 : i32
    %c0_i32_1 = arith.constant 0 : i32
    return %c0_i32, %c0_i32_0 : i32, i32
  }
  func.func @transform_6(%arg0: i32) -> (i32, i32) {
    %c0_i32 = arith.constant 0 : i32
    %c0_i32_0 = arith.constant 0 : i32
    return %arg0, %c0_i32 : i32, i32
  }
}

</mosaic_0001>

<bundles_post_ra>
// kernel: fc_forward.1
= control target key start
LH: loop header
LB: loop body
LE: loop exit
PB: predicated region body
PF: predicated region fallthrough
CT: control target
= control target key end

     0   :  { %11 = vsyncpa [#allocation3], 0  ;;  %s850_s0 = inlined_call_operand.vmem [shape: f32[16,128], index: 0, kind: input, shape index: {}]   ;;  %s851_s1 = inlined_call_operand.hbm [shape: bf16[128,256], index: 1, kind: input, shape index: {}]   ;;  %s852_s2 = inlined_call_operand.vmem [shape: f32[1,256], index: 2, kind: input, shape index: {}]   ;;  %s853_s3 = inlined_call_operand.hbm [shape: bf16[128,128], index: 3, kind: input, shape index: {}]   ;;  %s854_s4 = inlined_call_operand.hbm [shape: bf16[128,128], index: 4, kind: input, shape index: {}]   ;;  %s855_s5 = inlined_call_operand.vmem [shape: f32[2,128], index: 5, kind: input, shape index: {}]   ;;  %s856_s6 = inlined_call_operand.hbm [shape: f32[16,128], index: 6, kind: output, shape index: {}]  }
   0x1   :  { %12 = vsyncpa [#allocation6], 0 }
   0x2   :  { %13 = vsyncpa [#allocation4], 0  ;;  %s711_s21 = smov [#allocation5]   ;;  %s617_s25 = scalar_lea.hbm %s853_s3, 1024 }
   0x3   :  { %s35_s22 = sshll.u32 %s711_s21, 4  ;;  %p618_p0 = scmp.ne.s32.totalorder %s853_s3, %s617_s25  ;;  %s36_s22 = int_to_ptr.vmem [resolvable:$true] %s35_s22 }
   0x4   :  { %p621_p1 = scmp.lt.u32.totalorder %s617_s25, %s853_s3 }
   0x6   :  { %p623_p2 = pnand %p621_p1, %p618_p0 }
   0x8   :  { %626 = shalt.err (!%p623_p2)
}
   0x9   :  { %s627_s30 = scalar_lea.vmem %s36_s22, 1024  ;;  %p632_p4 = scmp.lt.s32.totalorder %s36_s22, %s36_s22 }
   0xa   :  { %p628_p3 = scmp.ne.s32.totalorder %s36_s22, %s627_s30  ;;  %p633_p5 = scmp.lt.s32.totalorder %s627_s30, %s627_s30 }
   0xc   :  { %p634_p6 = por %p633_p5, %p632_p4 }
   0xe   :  { %p635_p7 = pnand %p634_p6, %p628_p3 }
  0x10   :  { %638 = shalt.err (!%p635_p7)
}
  0x11   :  { %s712_s7 = smov 64   ;;  %s713_s8 = smov 4  }
  0x12   :  { %41 = dma.hbm_to_vmem [thread:$0]  %s853_s3, 1024, %s36_s22, [#allocation6], %s712_s7, %s712_s7, %s713_s8  }
  0x13   :  { %s714_s11 = smov [#allocation2]   ;;  %s639_s15 = scalar_lea.hbm %s851_s1, 2048 }
  0x14   :  { %s21_s12 = sshll.u32 %s714_s11, 4  ;;  %p640_p8 = scmp.ne.s32.totalorder %s851_s1, %s639_s15  ;;  %s22_s12 = int_to_ptr.vmem [resolvable:$true] %s21_s12 }
  0x15   :  { %p643_p9 = scmp.lt.u32.totalorder %s639_s15, %s851_s1 }
  0x17   :  { %p645_p10 = pnand %p643_p9, %p640_p8 }
  0x19   :  { %648 = shalt.err (!%p645_p10)
}
  0x1a   :  { %s649_s20 = scalar_lea.vmem %s22_s12, 2048  ;;  %p654_p12 = scmp.lt.s32.totalorder %s22_s12, %s22_s12 }
  0x1b   :  { %p650_p11 = scmp.ne.s32.totalorder %s22_s12, %s649_s20  ;;  %p655_p13 = scmp.lt.s32.totalorder %s649_s20, %s649_s20 }
  0x1d   :  { %p656_p0 = por %p655_p13, %p654_p12 }
  0x1f   :  { %p657_p1 = pnand %p656_p0, %p650_p11 }
  0x21   :  { %660 = shalt.err (!%p657_p1)
}
  0x22   :  { %s715_s3 = smov 128   ;;  %s716_s21 = smov 8  }
  0x23   :  { %27 = dma.hbm_to_vmem [thread:$0]  %s851_s1, 2048, %s22_s12, [#allocation3], %s715_s3, %s715_s3, %s716_s21  }
  0x24   :  { %s717_s24 = smov [#allocation7]   ;;  %s661_s28 = scalar_lea.hbm %s854_s4, 1024 }
  0x25   :  { %s47_s25 = sshll.u32 %s717_s24, 4  ;;  %p662_p2 = scmp.ne.s32.totalorder %s854_s4, %s661_s28  ;;  %s48_s25 = int_to_ptr.vmem [resolvable:$true] %s47_s25 }
  0x26   :  { %p665_p3 = scmp.lt.u32.totalorder %s661_s28, %s854_s4 }
  0x28   :  { %p667_p4 = pnand %p665_p3, %p662_p2 }
  0x2a   :  { %670 = shalt.err (!%p667_p4)
}
  0x2b   :  { %s671_s11 = scalar_lea.vmem %s48_s25, 1024  ;;  %p676_p6 = scmp.lt.s32.totalorder %s48_s25, %s48_s25 }
  0x2c   :  { %p672_p5 = scmp.ne.s32.totalorder %s48_s25, %s671_s11  ;;  %p677_p7 = scmp.lt.s32.totalorder %s671_s11, %s671_s11 }
  0x2e   :  { %p678_p8 = por %p677_p7, %p676_p6 }
  0x30   :  { %p679_p9 = pnand %p678_p8, %p672_p5 }
  0x32   :  { %682 = shalt.err (!%p679_p9)
}
  0x33   :  { %53 = dma.hbm_to_vmem [thread:$0]  %s854_s4, 1024, %s48_s25, [#allocation6], %s712_s7, %s712_s7, %s713_s8  }
  0x34   :  { %705 = dma.done.wait [#allocation3], 2048  }
  0x35   :  { %706 = vsyncadd [#allocation3], 4294965248 }
  0x36   :  { %707 = dma.done.wait [#allocation6], 2048  }
  0x37   :  { %708 = vsyncadd [#allocation6], 4294965248  ;;  %v718_v0 = vmov 0   ;;  %v719_v1 = vmov 0.0   ;;  %v577_v2 = vld [vmem:[#allocation2 + $0x4] ss:$8 sps:$4 sm:$0xff]   ;;  %v87_v35 = vlaneseq }
  0x38   :  { %209 = vmatprep.mubr.bf16.mxu0 %v718_v0  ;;  %526 = vmatprep.subr.bf16.mxu1 %v719_v1  ;;  %v579_v3 = vld [vmem:[#allocation2] ss:$8 sps:$4 sm:$0xff]   ;;  %v580_v4 = vld [vmem:[#allocation2 + $0x14] ss:$8 sps:$4 sm:$0xff]   ;;  %v582_v5 = vld [vmem:[#allocation2 + $0x10] ss:$8 sps:$4 sm:$0xff]  }
  0x39   :  { %177 = vmatprep.subr.bf16.mxu0 %v577_v2  ;;  %v583_v6 = vld [vmem:[#allocation2 + $0x24] ss:$8 sps:$4 sm:$0xff]   ;;  %v585_v7 = vld [vmem:[#allocation2 + $0x20] ss:$8 sps:$4 sm:$0xff]   ;;  %v586_v8 = vld [vmem:[#allocation2 + $0x34] ss:$8 sps:$4 sm:$0xff]  }
  0x3a   :  { %178 = vmatpush1.bf16.msra.mxu0 %v579_v3  ;;  %v588_v9 = vld [vmem:[#allocation2 + $0x30] ss:$8 sps:$4 sm:$0xff]   ;;  %v589_v10 = vld [vmem:[#allocation2 + $0x44] ss:$8 sps:$4 sm:$0xff]   ;;  %v591_v13 = vld [vmem:[#allocation2 + $0x40] ss:$8 sps:$4 sm:$0xff]  }
  0x3b   :  { %179 = vmatprep.subr.bf16.mxu0 %v580_v4  ;;  %v601_v11 = vld [vmem:[#allocation5] sm:$0xff]   ;;  %v602_v12 = vld [vmem:[#allocation5 + $0x8] sm:$0xff]   ;;  %v592_v14 = vld [vmem:[#allocation2 + $0x54] ss:$8 sps:$4 sm:$0xff]   ;;  %vm720_vm0 = vmmov 0   ;;  %v88_v36 = vshrl.u32 %v87_v35, 7 }
  0x3c   :  { %527 = vmatpush3.bf16.msra.mxu1 %v601_v11  ;;  %v594_v15 = vld [vmem:[#allocation2 + $0x50] ss:$8 sps:$4 sm:$0xff]   ;;  %v595_v17 = vld [vmem:[#allocation2 + $0x64] ss:$8 sps:$4 sm:$0xff]   ;;  %v597_v19 = vld [vmem:[#allocation2 + $0x60] ss:$8 sps:$4 sm:$0xff]   ;;  %542 = vmatprep.mubr.msk.bf16.mxu1 %vm720_vm0, %v719_v1 }
  0x3d   :  { %528 = vmatprep.subr.bf16.mxu1 %v719_v1  ;;  %v603_v16 = vld [vmem:[#allocation5 + $0x10] sm:$0xff]   ;;  %v604_v18 = vld [vmem:[#allocation5 + $0x18] sm:$0xff]   ;;  %v605_v21 = vld [vmem:[#allocation5 + $0x20] sm:$0xff]   ;;  %v89_v37 = vsub.s32 0, %v88_v36  ;;  %v93_v61 = vsub.s32 1, %v88_v36  ;;  %s721_s18 = smov [#allocation8]  }
  0x3e   :  { %180 = vmatpush1.bf16.msra.mxu0 %v582_v5  ;;  %v598_v20 = vld [vmem:[#allocation2 + $0x74] ss:$8 sps:$4 sm:$0xff]   ;;  %v600_v22 = vld [vmem:[#allocation2 + $0x70] ss:$8 sps:$4 sm:$0xff]   ;;  %v606_v26 = vld [vmem:[#allocation5 + $0x28] sm:$0xff]   ;;  %s461_s19 = sshll.u32 %s721_s18, 4  ;;  %s462_s19 = int_to_ptr.vmem [resolvable:$true] %s461_s19 }
  0x3f   :  { %181 = vmatprep.subr.bf16.mxu0 %v583_v6  ;;  %v66_v23 = vld [vmem:[%s850_s0] sm:$0xff]  ;;  %v67_v24 = vld [vmem:[%s850_s0 + $0x8] sm:$0xff]  ;;  %v609_v29 = vld [vmem:[#allocation7] sm:$0xff]   ;;  %s683_s20 = scalar_lea.vmem %s462_s19, 256  ;;  %p688_p11 = scmp.lt.s32.totalorder %s462_s19, %s462_s19 }
  0x40   :  { %529 = vmatpush3.bf16.msra.mxu1 %v602_v12  ;;  %v68_v25 = vpack.c.bf16 %v67_v24, %v66_v23  ;;  %v607_v27 = vld [vmem:[#allocation5 + $0x30] sm:$0xff]   ;;  %v608_v28 = vld [vmem:[#allocation5 + $0x38] sm:$0xff]   ;;  %v610_v30 = vld [vmem:[#allocation7 + $0x8] sm:$0xff]   ;;  %p684_p10 = scmp.ne.s32.totalorder %s462_s19, %s683_s20  ;;  %p689_p12 = scmp.lt.s32.totalorder %s683_s20, %s683_s20 }
  0x41   :  { %530 = vmatprep.subr.bf16.mxu1 %v719_v1  ;;  %v611_v31 = vld [vmem:[#allocation7 + $0x10] sm:$0xff]   ;;  %v612_v32 = vld [vmem:[#allocation7 + $0x18] sm:$0xff]   ;;  %v613_v33 = vld [vmem:[#allocation7 + $0x20] sm:$0xff]  }
  0x42   :  { %182 = vmatpush1.bf16.msra.mxu0 %v585_v7  ;;  %v614_v34 = vld [vmem:[#allocation7 + $0x28] sm:$0xff]   ;;  %v85_v38 = vld [vmem:[%s852_s2] sm:$0x3]  ;;  %v616_v50 = vld [vmem:[#allocation7 + $0x38] sm:$0xff]   ;;  %p690_p13 = por %p689_p12, %p688_p11 }
  0x43   :  { %183 = vmatprep.subr.bf16.mxu0 %v586_v8  ;;  %v90_v39 = vrot.slane %v85_v38, %v89_v37  ;;  %v615_v49 = vld [vmem:[#allocation7 + $0x30] sm:$0xff]   ;;  %v94_v63 = vrot.slane %v85_v38, %v93_v61 }
  0x44   :  { %531 = vmatpush3.bf16.msra.mxu1 %v603_v16  ;;  %v490_v51 = vld [vmem:[%s855_s5] ss:$0 sm:$0xff]  ;;  %v499_v62 = vld [vmem:[%s855_s5 + $0x1] ss:$0 sm:$0xff]  ;;  %p691_p0 = pnand %p690_p13, %p684_p10 }
  0x45   :  { %532 = vmatprep.subr.bf16.mxu1 %v719_v1 }
  0x46   :  { %184 = vmatpush1.bf16.msra.mxu0 %v588_v9 }
  0x47   :  { %185 = vmatprep.subr.bf16.mxu0 %v589_v10 }
  0x48   :  { %533 = vmatpush3.bf16.msra.mxu1 %v604_v18 }
  0x49   :  { %534 = vmatprep.subr.bf16.mxu1 %v719_v1 }
  0x4a   :  { %186 = vmatpush1.bf16.msra.mxu0 %v591_v13 }
  0x4b   :  { %187 = vmatprep.subr.bf16.mxu0 %v592_v14 }
  0x4c   :  { %535 = vmatpush3.bf16.msra.mxu1 %v605_v21 }
  0x4d   :  { %536 = vmatprep.subr.bf16.mxu1 %v719_v1 }
  0x4e   :  { %188 = vmatpush1.bf16.msra.mxu0 %v594_v15 }
  0x4f   :  { %189 = vmatprep.subr.bf16.mxu0 %v595_v17 }
  0x50   :  { %537 = vmatpush3.bf16.msra.mxu1 %v606_v26 }
  0x51   :  { %538 = vmatprep.subr.bf16.mxu1 %v719_v1 }
  0x52   :  { %190 = vmatpush1.bf16.msra.mxu0 %v597_v19 }
  0x53   :  { %191 = vmatprep.subr.bf16.mxu0 %v598_v20 }
  0x54   :  { %539 = vmatpush3.bf16.msra.mxu1 %v607_v27 }
  0x55   :  { %540 = vmatprep.subr.bf16.mxu1 %v719_v1 }
  0x56   :  { %192 = vmatpush1.bf16.msra.mxu0 %v600_v22 }
  0x57   :  { %546 = vmatprep.subr.bf16.mxu0 %v719_v1 }
  0x58   :  { %541 = vmatpush3.bf16.msra.mxu1 %v608_v28 }
  0x59   :  { %210 = vmatmul.mubr.bf16.vlgmr.msra.gmra.mrb[0].mxu0 %v68_v25 }
  0x5a   :  { %562 = vmatprep.mubr.msk.bf16.mxu0 %vm720_vm0, %v719_v1  ;;  %547 = vmatpush3.bf16.msra.mxu0 %v609_v29 }
  0x5b   :  { %548 = vmatprep.subr.bf16.mxu0 %v719_v1 }
  0x5e   :  { %549 = vmatpush3.bf16.msra.mxu0 %v610_v30 }
  0x5f   :  { %550 = vmatprep.subr.bf16.mxu0 %v719_v1 }
  0x62   :  { %551 = vmatpush3.bf16.msra.mxu0 %v611_v31 }
  0x63   :  { %552 = vmatprep.subr.bf16.mxu0 %v719_v1 }
  0x66   :  { %553 = vmatpush3.bf16.msra.mxu0 %v612_v32 }
  0x67   :  { %554 = vmatprep.subr.bf16.mxu0 %v719_v1 }
  0x6a   :  { %555 = vmatpush3.bf16.msra.mxu0 %v613_v33 }
  0x6b   :  { %556 = vmatprep.subr.bf16.mxu0 %v719_v1 }
  0x6e   :  { %557 = vmatpush3.bf16.msra.mxu0 %v614_v34 }
  0x6f   :  { %558 = vmatprep.subr.bf16.mxu0 %v719_v1 }
  0x72   :  { %559 = vmatpush3.bf16.msra.mxu0 %v615_v49 }
  0x73   :  { %560 = vmatprep.subr.bf16.mxu0 %v719_v1 }
  0x76   :  { %561 = vmatpush3.bf16.msra.mxu0 %v616_v50 }
 0x12c   :  { %v211_v40 = vpop.f32.mrb[0].mxu0 }
 0x12d   :  { %v212_v41 = vadd.f32 %v211_v40, %v90_v39  ;;  %v213_v42 = vpop.f32.mrb[1].mxu0 }
 0x12e   :  { %v215_v43 = vpop.f32.mrb[2].mxu0  ;;  %v214_v4 = vadd.f32 %v213_v42, %v94_v63 }
 0x12f   :  { %v216_v44 = vadd.f32 %v215_v43, %v90_v39  ;;  %v217_v45 = vpop.f32.mrb[3].mxu0  ;;  %v222_v46 = vmax.f32 %v212_v41, 0.0 }
 0x130   :  { %v218_v8 = vadd.f32 %v217_v45, %v94_v63 }
 0x131   :  { %v223_v47 = vmax.f32 %v216_v44, 0.0 }
 0x133   :  { %v224_v48 = vpack.c.bf16 %v223_v47, %v222_v46 }
 0x135   :  { %543 = vmatmul.mubr.bf16.vlgmr.msra.gmra.mrb[0].mxu1 %v224_v48 }
 0x208   :  { %v328_v52 = vpop.f32.mrb[0].mxu1 }
 0x209   :  { %v329_v53 = vadd.f32 %v490_v51, %v328_v52  ;;  %v544_v54 = vpop.f32.mrb[1].mxu1 }
 0x20a   :  { %v331_v55 = vpop.f32.mrb[2].mxu1 }
 0x20b   :  { %v332_v56 = vadd.f32 %v490_v51, %v331_v55  ;;  %v545_v57 = vpop.f32.mrb[3].mxu1  ;;  %v335_v58 = vmax.f32 %v329_v53, 0.0 }
 0x20d   :  { %v336_v59 = vmax.f32 %v332_v56, 0.0 }
 0x20f   :  { %v337_v60 = vpack.c.bf16 %v336_v59, %v335_v58 }
 0x211   :  { %563 = vmatmul.mubr.bf16.vlgmr.msra.gmra.mrb[4].mxu0 %v337_v60 }
 0x2e4   :  { %v441_v0 = vpop.f32.mrb[4].mxu0 }
 0x2e5   :  { %v442_v1 = vadd.f32 %v499_v62, %v441_v0  ;;  %v564_v2 = vpop.f32.mrb[5].mxu0 }
 0x2e6   :  { %v444_v3 = vpop.f32.mrb[6].mxu0 }
 0x2e7   :  { %v448_v5 = vmax.f32 %v442_v1, 0.0  ;;  %v445_v6 = vadd.f32 %v499_v62, %v444_v3  ;;  %v565_v7 = vpop.f32.mrb[7].mxu0 }
 0x2e9   :  { %v452_v9 = vadd.f32 %v448_v5, %v214_v4  ;;  %v449_v10 = vmax.f32 %v445_v6, 0.0 }
 0x2eb   :  { %454 = vst [vmem:[#allocation8] sm:$0xff] %v452_v9  ;;  %v453_v11 = vadd.f32 %v449_v10, %v218_v8 }
 0x2ed   :  { %455 = vst [vmem:[#allocation8 + $0x8] sm:$0xff] %v453_v11 }
 0x2ee   :  { %694 = shalt.err (!%p691_p0)
}
 0x2ef   :  { %s695_s23 = scalar_lea.hbm %s856_s6, 256 }
 0x2f0   :  { %p696_p1 = scmp.ne.s32.totalorder %s856_s6, %s695_s23  ;;  %p699_p2 = scmp.lt.u32.totalorder %s695_s23, %s856_s6 }
 0x2f2   :  { %p701_p3 = pnand %p699_p2, %p696_p1 }
 0x2f4   :  { %704 = shalt.err (!%p701_p3)
}
 0x2f5   :  { %467 = dma.vmem_to_hbm [thread:$0]  %s462_s19, 256, %s856_s6, [#allocation4], %s715_s3, %s715_s3, %s716_s21  }
 0x2f6   :  { %709 = dma.done.wait [#allocation4], 256  }
 0x2f7   :  { %710 = vsyncadd [#allocation4], 4294967040 }
 0x2f8   :  { %471 = vsyncpa [#allocation3], 1 }
 0x2f9   :  { %472 = vsyncpa [#allocation6], 1 }
 0x2fa   :  { %473 = vsyncpa [#allocation4], 1 }

</bundles_post_ra>
